<compile_context>
chip_gen: v6e
topology: v6e:2x2x1
jax: 0.10.0
libtpu: 0.0.40
codegen_flags: <defaults>
</compile_context>

<pallas_src>
import jax
import jax.numpy as jnp
from jax.experimental import pallas as pl
from jax.experimental.pallas import tpu as pltpu  # noqa: F401  (kept for TPU backend)

# ------------------------- model hyper-params (small) -----------------------
B = 8            # batch
C_IN = 3         # input channels (RGB, as resnet50 expects)
H = W = 16       # spatial
KSZ = 3          # conv kernel
STRIDE = 2
PAD = 1
HO = (H + 2 * PAD - KSZ) // STRIDE + 1    # 8
WO = HO
SPATIAL = HO * WO                         # 64 spatial positions per image
M = B * SPATIAL                           # 512 im2col rows
K_RAW = KSZ * KSZ * C_IN                  # 27
K_PAD = 128                               # lane-dense, zero-padded contraction dim
BACKBONE_OUT = 256   # stands in for resnet50's 2048
EMB = 128            # config['model']['embedding_size']
BN_EPS = 1e-5
NORM_EPS = 1e-12     # F.normalize eps


# ------------------------------ Pallas kernel -------------------------------
def fused_insightface_kernel(p_ref, cw_ref, lw_ref, bias_ref, o_ref):
    """Fused: conv(im2col matmul)+ReLU -> GAP(f32 mean) -> Linear(+BN folded) -> L2-norm.

    p_ref:    (M, K_PAD)            bf16  im2col patches (zero-padded K)
    cw_ref:   (K_PAD, BACKBONE_OUT) bf16  conv weight (padded rows are zero)
    lw_ref:   (BACKBONE_OUT, EMB)   bf16  linear weight with BN(eval) scale folded in
    bias_ref: (2, BACKBONE_OUT)     f32   row 0: conv bias, row 1[:EMB]: folded linear bias
    o_ref:    (B, EMB)              f32   L2-normalized embeddings
    """
    # --- backbone stand-in: conv as matmul + bias + ReLU (f32 accumulate) ---
    acc = jnp.dot(p_ref[...], cw_ref[...], preferred_element_type=jnp.float32)
    acc = jnp.maximum(acc + bias_ref[0:1, :], 0.0)              # (M, BACKBONE_OUT)

    # --- global average pool: f32 mean over spatial positions (lane dim kept) ---
    pooled = jnp.mean(acc.reshape(B, SPATIAL, BACKBONE_OUT), axis=1)   # (B, BACKBONE_OUT)

    # --- head: Dropout(eval)==identity -> Linear with BatchNorm1d(eval) folded in ---
    z = jnp.dot(pooled.astype(jnp.bfloat16), lw_ref[...],
                preferred_element_type=jnp.float32) + bias_ref[1:2, 0:EMB]   # (B, EMB)

    # --- F.normalize(p=2, dim=1): x * rsqrt(max(sum(x^2), eps^2)) -----------
    sumsq = jnp.sum(z * z, axis=1, keepdims=True)
    o_ref[...] = z * jax.lax.rsqrt(jnp.maximum(sumsq, NORM_EPS * NORM_EPS))


# ------------------------------- JAX glue -----------------------------------
def _im2col_nhwc(x_nhwc):
    """(B,H,W,C) bf16 -> (M, K_PAD) patches for 3x3/stride2/pad1 conv, K zero-padded."""
    xp = jnp.pad(x_nhwc, ((0, 0), (PAD, PAD), (PAD, PAD), (0, 0)))
    taps = []
    for ki in range(KSZ):
        for kj in range(KSZ):
            taps.append(
                xp[:, ki:ki + STRIDE * HO:STRIDE, kj:kj + STRIDE * WO:STRIDE, :])
    p = jnp.stack(taps, axis=3)                      # (B, HO, WO, KSZ*KSZ, C)
    p = p.reshape(M, K_RAW)
    return jnp.pad(p, ((0, 0), (0, K_PAD - K_RAW)))  # lane-dense K


def _full_spec(shape):
    ndim = len(shape)
    return pl.BlockSpec(shape, lambda: (0,) * ndim)


def insightface_forward(x_nchw, prepared):
    """Eval-mode forward: returns L2-normalized embeddings (B, EMB)."""
    # layout: convert NCHW (PyTorch) -> NHWC, cast to bf16 before im2col glue.
    x_nhwc = jnp.transpose(x_nchw, (0, 2, 3, 1)).astype(jnp.bfloat16)
    patches = _im2col_nhwc(x_nhwc)                              # (M, K_PAD) bf16

    embeddings = pl.pallas_call(
        fused_insightface_kernel,
        out_shape=jax.ShapeDtypeStruct((B, EMB), jnp.float32),
        in_specs=[_full_spec((M, K_PAD)),
                  _full_spec((K_PAD, BACKBONE_OUT)),
                  _full_spec((BACKBONE_OUT, EMB)),
                  _full_spec((2, BACKBONE_OUT))],
        out_specs=_full_spec((B, EMB)),
    )(patches, prepared['conv_w'], prepared['lin_w'], prepared['bias_pack'])

    return embeddings


def init_params(key):
    """Raw PyTorch-equivalent parameters (f32, BN stats separate)."""
    ks = jax.random.split(key, 6)
    scale = 0.05
    return {
        'conv_w': scale * jax.random.normal(ks[0], (K_RAW, BACKBONE_OUT), jnp.float32),
        'conv_b': scale * jax.random.normal(ks[1], (1, BACKBONE_OUT), jnp.float32),
        'lin_w': scale * jax.random.normal(ks[2], (BACKBONE_OUT, EMB), jnp.float32),
        'lin_b': scale * jax.random.normal(ks[3], (1, EMB), jnp.float32),
        'bn_gamma': 1.0 + 0.1 * jax.random.normal(ks[4], (1, EMB), jnp.float32),
        'bn_beta': 0.1 * jax.random.normal(ks[5], (1, EMB), jnp.float32),
        'bn_mean': jnp.zeros((1, EMB), jnp.float32),   # BN running mean
        'bn_var': jnp.ones((1, EMB), jnp.float32),     # BN running var
    }


def prepare_params(p):
    """One-time folding / packing / casting (done once, outside the jitted forward).

    Fold BN(eval) into the Linear layer:
      scale     = gamma * rsqrt(var + eps)
      lw_folded = lw * scale                      (per output column)
      lb_folded = (lb - mean) * scale + beta
    """
    bn_scale = p['bn_gamma'] * jax.lax.rsqrt(p['bn_var'] + BN_EPS)          # (1, EMB)
    lw_folded = (p['lin_w'] * bn_scale).astype(jnp.bfloat16)                # (C_OUT, EMB)
    lb_folded = (p['lin_b'] - p['bn_mean']) * bn_scale + p['bn_beta']       # (1, EMB)

    # Zero-pad conv weight contraction dim to K_PAD (patch columns are zero too).
    conv_w = jnp.pad(p['conv_w'], ((0, K_PAD - K_RAW), (0, 0))).astype(jnp.bfloat16)

    # Pack the two small per-feature bias vectors into one operand.
    lb_row = jnp.pad(lb_folded, ((0, 0), (0, BACKBONE_OUT - EMB)))          # (1, C_OUT)
    bias_pack = jnp.concatenate([p['conv_b'], lb_row], axis=0)              # (2, C_OUT) f32

    return {'conv_w': conv_w, 'lin_w': lw_folded, 'bias_pack': bias_pack}


if __name__ == "__main__":
    root = jax.random.PRNGKey(0)
    k_params, k_input = jax.random.split(root)
    params = init_params(k_params)
    prepared = jax.block_until_ready(prepare_params(params))   # fold/cast once

    # Input follows PyTorch NCHW convention.
    x = jax.random.normal(k_input, (B, C_IN, H, W), jnp.float32)

    emb = jax.jit(insightface_forward)(x, prepared)
    emb = jax.block_until_ready(emb)

    assert emb.shape == (B, EMB), emb.shape
    # Embeddings should be unit L2 norm (F.normalize semantics).
    norms = jnp.linalg.norm(emb, axis=1)
    assert bool(jnp.all(jnp.abs(norms - 1.0) < 1e-4)), norms
    assert bool(jnp.all(jnp.isfinite(emb)))

    print("KERNEL_OK")
</pallas_src>

<mosaic_0001>
module attributes {stable_mosaic.version = 11 : i64} {
  func.func @fused_insightface_kernel(%arg0: memref<512x128xbf16, #tpu.memory_space<vmem>>, %arg1: memref<128x256xbf16, #tpu.memory_space<vmem>>, %arg2: memref<256x128xbf16, #tpu.memory_space<vmem>>, %arg3: memref<2x256xf32, #tpu.memory_space<vmem>>, %arg4: memref<8x128xf32, #tpu.memory_space<vmem>>) attributes {dimension_semantics = [], scalar_prefetch = 0 : i64, scratch_operands = 0 : i64, tpu.core_type = #tpu.core_type<tc>} {
    %c0 = arith.constant 0 : index
    %c0_0 = arith.constant 0 : index
    %0 = vector.load %arg0[%c0, %c0_0] : memref<512x128xbf16, #tpu.memory_space<vmem>>, vector<512x128xbf16>
    %c0_1 = arith.constant 0 : index
    %c0_2 = arith.constant 0 : index
    %1 = vector.load %arg1[%c0_1, %c0_2] : memref<128x256xbf16, #tpu.memory_space<vmem>>, vector<128x256xbf16>
    %cst = arith.constant dense<0.000000e+00> : vector<512x256xf32>
    %2 = tpu.matmul %0, %1, %cst {dimension_numbers = #tpu.dot_dimension_numbers<[1], [0], [0], [1], [0, 0, 1, 1], [], []>} : vector<512x128xbf16>, vector<128x256xbf16>, vector<512x256xf32> -> vector<512x256xf32>
    %c0_3 = arith.constant 0 : index
    %c0_4 = arith.constant 0 : index
    %3 = vector.load %arg3[%c0_3, %c0_4] : memref<2x256xf32, #tpu.memory_space<vmem>>, vector<1x256xf32>
    %4 = vector.broadcast %3 : vector<1x256xf32> to vector<512x256xf32>
    %5 = arith.addf %2, %4 : vector<512x256xf32>
    %cst_5 = arith.constant 0.000000e+00 : f32
    %6 = vector.broadcast %cst_5 : f32 to vector<512x256xf32>
    %7 = arith.maximumf %5, %6 : vector<512x256xf32>
    %8 = vector.shape_cast %7 : vector<512x256xf32> to vector<8x64x256xf32>
    %cst_6 = arith.constant dense<0.000000e+00> : vector<8x256xf32>
    %9 = vector.multi_reduction <add>, %8, %cst_6 [1] : vector<8x64x256xf32> to vector<8x256xf32>
    %cst_7 = arith.constant 6.400000e+01 : f32
    %10 = vector.broadcast %cst_7 : f32 to vector<8x256xf32>
    %11 = arith.divf %9, %10 : vector<8x256xf32>
    %12 = arith.truncf %11 : vector<8x256xf32> to vector<8x256xbf16>
    %c0_8 = arith.constant 0 : index
    %c0_9 = arith.constant 0 : index
    %13 = vector.load %arg2[%c0_8, %c0_9] : memref<256x128xbf16, #tpu.memory_space<vmem>>, vector<256x128xbf16>
    %cst_10 = arith.constant dense<0.000000e+00> : vector<8x128xf32>
    %14 = tpu.matmul %12, %13, %cst_10 {dimension_numbers = #tpu.dot_dimension_numbers<[1], [0], [0], [1], [0, 0, 1, 1], [], []>} : vector<8x256xbf16>, vector<256x128xbf16>, vector<8x128xf32> -> vector<8x128xf32>
    %c1 = arith.constant 1 : index
    %c0_11 = arith.constant 0 : index
    %15 = vector.load %arg3[%c1, %c0_11] : memref<2x256xf32, #tpu.memory_space<vmem>>, vector<1x128xf32>
    %16 = vector.broadcast %15 : vector<1x128xf32> to vector<8x128xf32>
    %17 = arith.addf %14, %16 : vector<8x128xf32>
    %18 = arith.mulf %17, %17 : vector<8x128xf32>
    %cst_12 = arith.constant dense<0.000000e+00> : vector<8xf32>
    %19 = vector.multi_reduction <add>, %18, %cst_12 [1] : vector<8x128xf32> to vector<8xf32>
    %20 = vector.shape_cast %19 : vector<8xf32> to vector<8x1xf32>
    %cst_13 = arith.constant 1.000000e-24 : f32
    %21 = vector.broadcast %cst_13 : f32 to vector<8x1xf32>
    %22 = arith.maximumf %20, %21 : vector<8x1xf32>
    %23 = math.rsqrt %22 : vector<8x1xf32>
    %24 = vector.broadcast %23 : vector<8x1xf32> to vector<8x128xf32>
    %25 = arith.mulf %17, %24 : vector<8x128xf32>
    %c0_14 = arith.constant 0 : index
    %c0_15 = arith.constant 0 : index
    %26 = vector.load %arg4[%c0_14, %c0_15] : memref<8x128xf32, #tpu.memory_space<vmem>>, vector<8x128xf32>
    tpu.vector_store %arg4[%c0_14, %c0_15], %25 {strides = array<i32>} : memref<8x128xf32, #tpu.memory_space<vmem>>, vector<8x128xf32>,
    return
  }
}

</mosaic_0001>

<bundles_post_ra>
// kernel: insightface_forward.1
= control target key start
LH: loop header
LB: loop body
LE: loop exit
PB: predicated region body
PF: predicated region fallthrough
CT: control target
= control target key end

     0   :  { %v1557_v2 = vmov 0   ;;  %s2098_s0 = inlined_call_operand.vmem [shape: bf16[512,128], index: 0, kind: input, shape index: {}]   ;;  %s2099_s1 = inlined_call_operand.vmem [shape: bf16[128,256], index: 1, kind: input, shape index: {}]   ;;  %s2100_s2 = inlined_call_operand.vmem [shape: bf16[256,128], index: 2, kind: input, shape index: {}]   ;;  %s2101_s3 = inlined_call_operand.vmem [shape: f32[2,256], index: 3, kind: input, shape index: {}]   ;;  %s2102_s4 = inlined_call_operand.hbm [shape: f32[8,128], index: 4, kind: output, shape index: {}]  }
   0x1   :  { %v1461_v0 = vld [vmem:[%s2099_s1 + $0x74] ss:$8 sps:$4 sm:$0xff]   ;;  %v1463_v1 = vld [vmem:[%s2099_s1 + $0x70] ss:$8 sps:$4 sm:$0xff]   ;;  %415 = vmatprep.mubr.bf16.mxu0 %v1557_v2  ;;  %585 = vmatprep.mubr.bf16.mxu1 %v1557_v2  ;;  %v1464_v3 = vld [vmem:[%s2099_s1 + $0x64] ss:$8 sps:$4 sm:$0xff]  }
   0x2   :  { %383 = vmatprep.subr.bf16.mxu0 %v1461_v0  ;;  %1443 = vmatprep.subr.bf16.mxu1 %v1461_v0  ;;  %v1466_v4 = vld [vmem:[%s2099_s1 + $0x60] ss:$8 sps:$4 sm:$0xff]   ;;  %v1467_v5 = vld [vmem:[%s2099_s1 + $0x54] ss:$8 sps:$4 sm:$0xff]   ;;  %v1469_v6 = vld [vmem:[%s2099_s1 + $0x50] ss:$8 sps:$4 sm:$0xff]  }
   0x3   :  { %384 = vmatpush1.bf16.msra.mxu0 %v1463_v1  ;;  %1451 = vmatpush1.bf16.msra.mxu1 %v1463_v1  ;;  %v1470_v7 = vld [vmem:[%s2099_s1 + $0x44] ss:$8 sps:$4 sm:$0xff]   ;;  %v1472_v8 = vld [vmem:[%s2099_s1 + $0x40] ss:$8 sps:$4 sm:$0xff]   ;;  %v1473_v9 = vld [vmem:[%s2099_s1 + $0x34] ss:$8 sps:$4 sm:$0xff]  }
   0x4   :  { %385 = vmatprep.subr.bf16.mxu0 %v1464_v3  ;;  %1444 = vmatprep.subr.bf16.mxu1 %v1464_v3  ;;  %v1475_v10 = vld [vmem:[%s2099_s1 + $0x30] ss:$8 sps:$4 sm:$0xff]   ;;  %v1476_v11 = vld [vmem:[%s2099_s1 + $0x24] ss:$8 sps:$4 sm:$0xff]   ;;  %v1478_v12 = vld [vmem:[%s2099_s1 + $0x20] ss:$8 sps:$4 sm:$0xff]  }
   0x5   :  { %v1479_v13 = vld [vmem:[%s2099_s1 + $0x14] ss:$8 sps:$4 sm:$0xff]   ;;  %v1481_v14 = vld [vmem:[%s2099_s1 + $0x10] ss:$8 sps:$4 sm:$0xff]   ;;  %v1482_v15 = vld [vmem:[%s2099_s1 + $0x4] ss:$8 sps:$4 sm:$0xff]  }
   0x6   :  { %v1484_v16 = vld [vmem:[%s2099_s1] ss:$8 sps:$4 sm:$0xff]   ;;  %v1488_v20 = vld [vmem:[%s2098_s0 + $0x90] sm:$0xff]   ;;  %v1490_v22 = vld [vmem:[%s2098_s0 + $0x98] sm:$0xff]  }
   0x7   :  { %386 = vmatpush1.bf16.msra.mxu0 %v1466_v4  ;;  %1452 = vmatpush1.bf16.msra.mxu1 %v1466_v4  ;;  %v1485_v17 = vld [vmem:[%s2098_s0] sm:$0xff]   ;;  %v1486_v18 = vld [vmem:[%s2098_s0 + $0x88] sm:$0xff]   ;;  %v1489_v21 = vld [vmem:[%s2098_s0 + $0x10] sm:$0xff]  }
   0x8   :  { %387 = vmatprep.subr.bf16.mxu0 %v1467_v5  ;;  %1445 = vmatprep.subr.bf16.mxu1 %v1467_v5  ;;  %v1487_v19 = vld [vmem:[%s2098_s0 + $0x8] sm:$0xff]  }
   0xb   :  { %388 = vmatpush1.bf16.msra.mxu0 %v1469_v6  ;;  %1453 = vmatpush1.bf16.msra.mxu1 %v1469_v6 }
   0xc   :  { %389 = vmatprep.subr.bf16.mxu0 %v1470_v7  ;;  %1446 = vmatprep.subr.bf16.mxu1 %v1470_v7 }
   0xf   :  { %390 = vmatpush1.bf16.msra.mxu0 %v1472_v8  ;;  %1454 = vmatpush1.bf16.msra.mxu1 %v1472_v8 }
  0x10   :  { %391 = vmatprep.subr.bf16.mxu0 %v1473_v9  ;;  %1447 = vmatprep.subr.bf16.mxu1 %v1473_v9 }
  0x13   :  { %392 = vmatpush1.bf16.msra.mxu0 %v1475_v10  ;;  %1455 = vmatpush1.bf16.msra.mxu1 %v1475_v10 }
  0x14   :  { %393 = vmatprep.subr.bf16.mxu0 %v1476_v11  ;;  %1448 = vmatprep.subr.bf16.mxu1 %v1476_v11 }
  0x17   :  { %394 = vmatpush1.bf16.msra.mxu0 %v1478_v12  ;;  %1456 = vmatpush1.bf16.msra.mxu1 %v1478_v12 }
  0x18   :  { %395 = vmatprep.subr.bf16.mxu0 %v1479_v13  ;;  %1449 = vmatprep.subr.bf16.mxu1 %v1479_v13 }
  0x1b   :  { %396 = vmatpush1.bf16.msra.mxu0 %v1481_v14  ;;  %1457 = vmatpush1.bf16.msra.mxu1 %v1481_v14 }
  0x1c   :  { %397 = vmatprep.subr.bf16.mxu0 %v1482_v15  ;;  %1450 = vmatprep.subr.bf16.mxu1 %v1482_v15 }
  0x1f   :  { %398 = vmatpush1.bf16.msra.mxu0 %v1484_v16  ;;  %1458 = vmatpush1.bf16.msra.mxu1 %v1484_v16 }
  0x22   :  { %416 = vmatmul.mubr.bf16.vlgmr.msra.gmra.mxu0 %v1485_v17  ;;  %586 = vmatmul.mubr.bf16.vlgmr.msra.gmra.mxu1 %v1486_v18 }
  0x23   :  { %425 = vmatprep.mubr.bf16.mxu0 %v1557_v2  ;;  %595 = vmatprep.mubr.bf16.mxu1 %v1557_v2 }
  0x2a   :  { %426 = vmatmul.mubr.bf16.gmra.mxu0 %v1487_v19  ;;  %596 = vmatmul.mubr.bf16.gmra.mxu1 %v1488_v20 }
  0x2b   :  { %435 = vmatprep.mubr.bf16.mxu0 %v1557_v2  ;;  %605 = vmatprep.mubr.bf16.mxu1 %v1557_v2 }
  0x32   :  { %436 = vmatmul.mubr.bf16.gmra.mxu0 %v1489_v21  ;;  %606 = vmatmul.mubr.bf16.gmra.mxu1 %v1490_v22 }
  0x33   :  { %445 = vmatprep.mubr.bf16.mxu0 %v1557_v2  ;;  %615 = vmatprep.mubr.bf16.mxu1 %v1557_v2 }
  0x34   :  { %9 = vsyncpa [#allocation3], 0  ;;  %v1491_v23 = vld [vmem:[%s2098_s0 + $0x18] sm:$0xff]   ;;  %v1492_v24 = vld [vmem:[%s2098_s0 + $0xa0] sm:$0xff]   ;;  %v101_v55 = vlaneseq  ;;  %vm1174_vm0 = vcmask 1041409   ;;  %vm1176_vm1 = vcmask 1042434  }
  0x35   :  { %v1493_v25 = vld [vmem:[%s2098_s0 + $0x20] sm:$0xff]   ;;  %v1494_v26 = vld [vmem:[%s2098_s0 + $0xa8] sm:$0xff]   ;;  %v1496_v28 = vld [vmem:[%s2098_s0 + $0xb0] sm:$0xff]   ;;  %vm1178_vm2 = vcmask 1043459   ;;  %vm1180_vm3 = vcmask 1044484   ;;  %vm1182_vm4 = vcmask 1045509  }
  0x36   :  { %v1495_v27 = vld [vmem:[%s2098_s0 + $0x28] sm:$0xff]   ;;  %v1497_v29 = vld [vmem:[%s2098_s0 + $0x30] sm:$0xff]   ;;  %v1498_v30 = vld [vmem:[%s2098_s0 + $0xb8] sm:$0xff]   ;;  %v102_v56 = vshrl.u32 %v101_v55, 7  ;;  %vm1184_vm5 = vcmask 1046534   ;;  %vm1186_vm6 = vcmask 1047559  }
  0x37   :  { %v1499_v31 = vld [vmem:[%s2098_s0 + $0x38] sm:$0xff]   ;;  %v1500_v32 = vld [vmem:[%s2098_s0 + $0xc0] sm:$0xff]   ;;  %v1502_v34 = vld [vmem:[%s2098_s0 + $0xc8] sm:$0xff]   ;;  %s1558_s11 = smov [#allocation2]  }
  0x38   :  { %v1501_v33 = vld [vmem:[%s2098_s0 + $0x40] sm:$0xff]   ;;  %v1503_v35 = vld [vmem:[%s2098_s0 + $0x48] sm:$0xff]   ;;  %v1504_v36 = vld [vmem:[%s2098_s0 + $0xd0] sm:$0xff]   ;;  %v103_v59 = vsub.s32 0, %v102_v56  ;;  %v107_v63 = vsub.s32 1, %v102_v56 }
  0x39   :  { %v1505_v37 = vld [vmem:[%s2098_s0 + $0x50] sm:$0xff]   ;;  %v1506_v38 = vld [vmem:[%s2098_s0 + $0xd8] sm:$0xff]   ;;  %v1508_v40 = vld [vmem:[%s2098_s0 + $0xe0] sm:$0xff]  }
  0x3a   :  { %446 = vmatmul.mubr.bf16.gmra.mxu0 %v1491_v23  ;;  %616 = vmatmul.mubr.bf16.gmra.mxu1 %v1492_v24  ;;  %v1507_v39 = vld [vmem:[%s2098_s0 + $0x58] sm:$0xff]   ;;  %v1509_v41 = vld [vmem:[%s2098_s0 + $0x60] sm:$0xff]   ;;  %v1510_v42 = vld [vmem:[%s2098_s0 + $0xe8] sm:$0xff]  }
  0x3b   :  { %455 = vmatprep.mubr.bf16.mxu0 %v1557_v2  ;;  %625 = vmatprep.mubr.bf16.mxu1 %v1557_v2  ;;  %v1511_v43 = vld [vmem:[%s2098_s0 + $0x68] sm:$0xff]   ;;  %v1512_v44 = vld [vmem:[%s2098_s0 + $0xf0] sm:$0xff]   ;;  %v1514_v46 = vld [vmem:[%s2098_s0 + $0xf8] sm:$0xff]  }
  0x3c   :  { %v1513_v45 = vld [vmem:[%s2098_s0 + $0x70] sm:$0xff]   ;;  %v1515_v47 = vld [vmem:[%s2098_s0 + $0x78] sm:$0xff]   ;;  %v1516_v48 = vld [vmem:[%s2098_s0 + $0x80] sm:$0xff]   ;;  %s1348_s0 = sshll.u32 %s1558_s11, 4  ;;  %s1349_s0 = int_to_ptr.vmem [resolvable:$true] %s1348_s0 }
  0x3d   :  { %v1517_v49 = vld [vmem:[%s2100_s2 + $0x78] sm:$0xff]   ;;  %v1519_v51 = vld [vmem:[%s2100_s2 + $0x70] sm:$0xff]   ;;  %v1521_v53 = vld [vmem:[%s2100_s2 + $0x68] sm:$0xff]   ;;  %s1535_s12 = scalar_lea.vmem %s1349_s0, 128  ;;  %p1540_p1 = scmp.lt.s32.totalorder %s1349_s0, %s1349_s0 }
  0x3e   :  { %1421 = vmatprep.subr.bf16.mxu1 %v1517_v49  ;;  %v1518_v50 = vld [vmem:[%s2100_s2 + $0x38] sm:$0xff]   ;;  %v1520_v52 = vld [vmem:[%s2100_s2 + $0x30] sm:$0xff]   ;;  %v1522_v54 = vld [vmem:[%s2100_s2 + $0x28] sm:$0xff]   ;;  %p1536_p0 = scmp.ne.s32.totalorder %s1349_s0, %s1535_s12  ;;  %p1541_p2 = scmp.lt.s32.totalorder %s1535_s12, %s1535_s12 }
  0x3f   :  { %1422 = vmatpush3.bf16.msra.mxu1 %v1518_v50  ;;  %v1523_v57 = vld [vmem:[%s2100_s2 + $0x60] sm:$0xff]   ;;  %v1525_v60 = vld [vmem:[%s2100_s2 + $0x58] sm:$0xff]  }
  0x40   :  { %1423 = vmatprep.subr.bf16.mxu1 %v1519_v51  ;;  %v1524_v58 = vld [vmem:[%s2100_s2 + $0x20] sm:$0xff]   ;;  %v1526_v61 = vld [vmem:[%s2100_s2 + $0x18] sm:$0xff]   ;;  %p1542_p3 = por %p1541_p2, %p1540_p1 }
  0x41   :  { %v99_v62 = vld [vmem:[%s2101_s3] ss:$2 sm:$0x3] }
  0x42   :  { %456 = vmatmul.mubr.bf16.gmra.mxu0 %v1493_v25  ;;  %626 = vmatmul.mubr.bf16.gmra.mxu1 %v1494_v26  ;;  %v1793_v0 = vrot.slane %v99_v62, %v103_v59  ;;  %v1797_v3 = vrot.slane %v99_v62, %v107_v63  ;;  %p1543_p4 = pnand %p1542_p3, %p1536_p0 }
  0x43   :  { %465 = vmatprep.mubr.bf16.mxu0 %v1557_v2  ;;  %635 = vmatprep.mubr.bf16.mxu1 %v1557_v2 }
  0x44   :  { %1424 = vmatpush3.bf16.msra.mxu1 %v1520_v52 }
  0x45   :  { %1425 = vmatprep.subr.bf16.mxu1 %v1521_v53 }
  0x48   :  { %1426 = vmatpush3.bf16.msra.mxu1 %v1522_v54 }
  0x49   :  { %1427 = vmatprep.subr.bf16.mxu1 %v1523_v57 }
  0x4a   :  { %466 = vmatmul.mubr.bf16.gmra.mxu0 %v1495_v27  ;;  %636 = vmatmul.mubr.bf16.gmra.mxu1 %v1496_v28 }
  0x4b   :  { %475 = vmatprep.mubr.bf16.mxu0 %v1557_v2  ;;  %645 = vmatprep.mubr.bf16.mxu1 %v1557_v2 }
  0x4c   :  { %1428 = vmatpush3.bf16.msra.mxu1 %v1524_v58 }
  0x4d   :  { %1429 = vmatprep.subr.bf16.mxu1 %v1525_v60 }
  0x50   :  { %1430 = vmatpush3.bf16.msra.mxu1 %v1526_v61 }
  0x52   :  { %476 = vmatmul.mubr.bf16.gmra.mxu0 %v1497_v29  ;;  %646 = vmatmul.mubr.bf16.gmra.mxu1 %v1498_v30 }
  0x53   :  { %485 = vmatprep.mubr.bf16.mxu0 %v1557_v2  ;;  %655 = vmatprep.mubr.bf16.mxu1 %v1557_v2 }
  0x5a   :  { %486 = vmatmul.mubr.bf16.gmra.mxu0 %v1499_v31  ;;  %656 = vmatmul.mubr.bf16.gmra.mxu1 %v1500_v32 }
  0x5b   :  { %495 = vmatprep.mubr.bf16.mxu0 %v1557_v2  ;;  %665 = vmatprep.mubr.bf16.mxu1 %v1557_v2 }
  0x62   :  { %496 = vmatmul.mubr.bf16.gmra.mxu0 %v1501_v33  ;;  %666 = vmatmul.mubr.bf16.gmra.mxu1 %v1502_v34 }
  0x63   :  { %505 = vmatprep.mubr.bf16.mxu0 %v1557_v2  ;;  %675 = vmatprep.mubr.bf16.mxu1 %v1557_v2 }
  0x6a   :  { %506 = vmatmul.mubr.bf16.gmra.mxu0 %v1503_v35  ;;  %676 = vmatmul.mubr.bf16.gmra.mxu1 %v1504_v36 }
  0x6b   :  { %515 = vmatprep.mubr.bf16.mxu0 %v1557_v2  ;;  %685 = vmatprep.mubr.bf16.mxu1 %v1557_v2 }
  0x72   :  { %516 = vmatmul.mubr.bf16.gmra.mxu0 %v1505_v37  ;;  %686 = vmatmul.mubr.bf16.gmra.mxu1 %v1506_v38 }
  0x73   :  { %525 = vmatprep.mubr.bf16.mxu0 %v1557_v2  ;;  %695 = vmatprep.mubr.bf16.mxu1 %v1557_v2 }
  0x7a   :  { %526 = vmatmul.mubr.bf16.gmra.mxu0 %v1507_v39  ;;  %696 = vmatmul.mubr.bf16.gmra.mxu1 %v1508_v40 }
  0x7b   :  { %535 = vmatprep.mubr.bf16.mxu0 %v1557_v2  ;;  %705 = vmatprep.mubr.bf16.mxu1 %v1557_v2 }
  0x82   :  { %536 = vmatmul.mubr.bf16.gmra.mxu0 %v1509_v41  ;;  %706 = vmatmul.mubr.bf16.gmra.mxu1 %v1510_v42 }
  0x83   :  { %545 = vmatprep.mubr.bf16.mxu0 %v1557_v2  ;;  %715 = vmatprep.mubr.bf16.mxu1 %v1557_v2 }
  0x8a   :  { %546 = vmatmul.mubr.bf16.gmra.mxu0 %v1511_v43  ;;  %716 = vmatmul.mubr.bf16.gmra.mxu1 %v1512_v44 }
  0x8b   :  { %555 = vmatprep.mubr.bf16.mxu0 %v1557_v2  ;;  %725 = vmatprep.mubr.bf16.mxu1 %v1557_v2 }
  0x92   :  { %556 = vmatmul.mubr.bf16.gmra.mxu0 %v1513_v45  ;;  %726 = vmatmul.mubr.bf16.gmra.mxu1 %v1514_v46 }
  0x93   :  { %565 = vmatprep.mubr.bf16.mxu0 %v1557_v2 }
  0x9a   :  { %566 = vmatmul.mubr.bf16.gmra.mxu0 %v1515_v47 }
  0x9b   :  { %575 = vmatprep.mubr.bf16.mxu0 %v1557_v2 }
  0xa2   :  { %576 = vmatmul.mubr.bf16.gmra.mxu0 %v1516_v48 }
  0xe2   :  { %v417_v1 = vpop.f32.mrf.mxu0  ;;  %v1795_v2 = vpop.f32.mrf.mxu1 }
  0xe3   :  { %v418_v6 = vadd.f32 %v417_v1, %v1793_v0 }
  0xe4   :  { %v419_v4 = vpop.f32.mrf.mxu0  ;;  %v1799_v5 = vpop.f32.mrf.mxu1 }
  0xe5   :  { %v420_v9 = vadd.f32 %v419_v4, %v1797_v3  ;;  %v736_v13 = vmax.f32 %v418_v6, 0.0 }
  0xe6   :  { %v421_v7 = vpop.f32.mrf.mxu0  ;;  %v1802_v8 = vpop.f32.mrf.mxu1 }
  0xe7   :  { %v422_v10 = vadd.f32 %v421_v7, %v1793_v0  ;;  %v737_v18 = vmax.f32 %v420_v9, 0.0 }
  0xe8   :  { %v423_v11 = vpop.f32.mrf.mxu0  ;;  %v1806_v12 = vpop.f32.mrf.mxu1 }
  0xe9   :  { %v738_v14 = vmax.f32 %v422_v10, 0.0  ;;  %v424_v15 = vadd.f32 %v423_v11, %v1797_v3 }
  0xea   :  { %v427_v16 = vpop.f32.mrf.mxu0  ;;  %v1809_v17 = vpop.f32.mrf.mxu1 }
  0xeb   :  { %v864_v19 = vadd.f32 %v738_v14, %v736_v13  ;;  %v739_v20 = vmax.f32 %v424_v15, 0.0  ;;  %v428_v21 = vadd.f32 %v427_v16, %v1793_v0 }
  0xec   :  { %v429_v22 = vpop.f32.mrf.mxu0  ;;  %v1812_v23 = vpop.f32.mrf.mxu1 }
  0xed   :  { %v877_v24 = vadd.f32 %v739_v20, %v737_v18  ;;  %v740_v25 = vmax.f32 %v428_v21, 0.0  ;;  %v430_v26 = vadd.f32 %v429_v22, %v1797_v3 }
  0xee   :  { %v431_v27 = vpop.f32.mrf.mxu0  ;;  %v1815_v28 = vpop.f32.mrf.mxu1 }
  0xef   :  { %v865_v29 = vadd.f32 %v864_v19, %v740_v25  ;;  %v741_v30 = vmax.f32 %v430_v26, 0.0  ;;  %v432_v31 = vadd.f32 %v431_v27, %v1793_v0 }
  0xf0   :  { %v433_v32 = vpop.f32.mrf.mxu0  ;;  %v1818_v33 = vpop.f32.mrf.mxu1 }
  0xf1   :  { %v878_v34 = vadd.f32 %v877_v24, %v741_v30  ;;  %v742_v35 = vmax.f32 %v432_v31, 0.0  ;;  %v434_v36 = vadd.f32 %v433_v32, %v1797_v3 }
  0xf2   :  { %v437_v37 = vpop.f32.mrf.mxu0  ;;  %v1821_v38 = vpop.f32.mrf.mxu1 }
  0xf3   :  { %v866_v39 = vadd.f32 %v865_v29, %v742_v35  ;;  %v743_v40 = vmax.f32 %v434_v36, 0.0  ;;  %v438_v41 = vadd.f32 %v437_v37, %v1793_v0  ;;  %v1527_v35 = vld [vmem:[%s2100_s2 + $0x50] sm:$0xff]   ;;  %v1529_v37 = vld [vmem:[%s2100_s2 + $0x48] sm:$0xff]  }
  0xf4   :  { %v439_v42 = vpop.f32.mrf.mxu0  ;;  %v1824_v43 = vpop.f32.mrf.mxu1  ;;  %v1528_v36 = vld [vmem:[%s2100_s2 + $0x10] sm:$0xff]   ;;  %1431 = vmatprep.subr.bf16.mxu1 %v1527_v35 }
  0xf5   :  { %v879_v44 = vadd.f32 %v878_v34, %v743_v40  ;;  %v744_v45 = vmax.f32 %v438_v41, 0.0  ;;  %v440_v46 = vadd.f32 %v439_v42, %v1797_v3  ;;  %1432 = vmatpush3.bf16.msra.mxu1 %v1528_v36 }
  0xf6   :  { %v441_v47 = vpop.f32.mrf.mxu0  ;;  %v1827_v48 = vpop.f32.mrf.mxu1  ;;  %1433 = vmatprep.subr.bf16.mxu1 %v1529_v37 }
  0xf7   :  { %v867_v49 = vadd.f32 %v866_v39, %v744_v45  ;;  %v745_v50 = vmax.f32 %v440_v46, 0.0  ;;  %v442_v51 = vadd.f32 %v441_v47, %v1793_v0 }
  0xf8   :  { %v443_v52 = vpop.f32.mrf.mxu0  ;;  %v1830_v53 = vpop.f32.mrf.mxu1 }
  0xf9   :  { %v880_v54 = vadd.f32 %v879_v44, %v745_v50  ;;  %v746_v55 = vmax.f32 %v442_v51, 0.0  ;;  %v444_v56 = vadd.f32 %v443_v52, %v1797_v3  ;;  %v1530_v52 = vld [vmem:[%s2100_s2 + $0x8] sm:$0xff]  }
  0xfa   :  { %v447_v57 = vpop.f32.mrf.mxu0  ;;  %v617_v58 = vpop.f32.mrf.mxu1  ;;  %1434 = vmatpush3.bf16.msra.mxu1 %v1530_v52 }
  0xfb   :  { %v868_v59 = vadd.f32 %v867_v49, %v746_v55  ;;  %v747_v60 = vmax.f32 %v444_v56, 0.0  ;;  %v448_v61 = vadd.f32 %v447_v57, %v1793_v0  ;;  %v618_v63 = vadd.f32 %v617_v58, %v1793_v0  ;;  %v1531_v56 = vld [vmem:[%s2100_s2 + $0x40] sm:$0xff]  }
  0xfc   :  { %v449_v62 = vpop.f32.mrf.mxu0  ;;  %v619_v1 = vpop.f32.mrf.mxu1  ;;  %1435 = vmatprep.subr.bf16.mxu1 %v1531_v56 }
  0xfd   :  { %v881_v4 = vadd.f32 %v880_v54, %v747_v60  ;;  %v748_v6 = vmax.f32 %v448_v61, 0.0  ;;  %v450_v7 = vadd.f32 %v449_v62, %v1797_v3  ;;  %v620_v10 = vadd.f32 %v619_v1, %v1797_v3 }
  0xfe   :  { %v451_v9 = vpop.f32.mrf.mxu0  ;;  %v621_v11 = vpop.f32.mrf.mxu1  ;;  %v816_v18 = vmax.f32 %v618_v63, 0.0 }
  0xff   :  { %v869_v13 = vadd.f32 %v868_v59, %v748_v6  ;;  %v749_v14 = vmax.f32 %v450_v7, 0.0  ;;  %v452_v15 = vadd.f32 %v451_v9, %v1793_v0  ;;  %v622_v19 = vadd.f32 %v621_v11, %v1793_v0  ;;  %v1532_v11 = vld [vmem:[%s2100_s2] sm:$0xff]  }
 0x100   :  { %v453_v16 = vpop.f32.mrf.mxu0  ;;  %v623_v20 = vpop.f32.mrf.mxu1  ;;  %v817_v27 = vmax.f32 %v620_v10, 0.0  ;;  %1436 = vmatpush3.bf16.msra.mxu1 %v1532_v11 }
 0x101   :  { %v882_v21 = vadd.f32 %v881_v4, %v749_v14  ;;  %v750_v22 = vmax.f32 %v452_v15, 0.0  ;;  %v454_v24 = vadd.f32 %v453_v16, %v1797_v3  ;;  %v624_v25 = vadd.f32 %v623_v20, %v1797_v3 }
 0x102   :  { %v457_v26 = vpop.f32.mrf.mxu0  ;;  %v818_v29 = vmax.f32 %v622_v19, 0.0  ;;  %v627_v30 = vpop.f32.mrf.mxu1 }
 0x103   :  { %v1841_v31 = vadd.f32 %v869_v13, %v750_v22  ;;  %v751_v32 = vmax.f32 %v454_v24, 0.0  ;;  %v819_v34 = vmax.f32 %v624_v25, 0.0  ;;  %v628_v41 = vadd.f32 %v627_v30, %v1793_v0 }
 0x104   :  { %v459_v39 = vpop.f32.mrf.mxu0  ;;  %v994_v40 = vadd.f32 %v818_v29, %v816_v18  ;;  %v629_v42 = vpop.f32.mrf.mxu1  ;;  %v458_v45 = vadd.f32 %v457_v26, %v1793_v0 }
 0x105   :  { %v1853_v44 = vadd.f32 %v882_v21, %v751_v32  ;;  %v1007_v47 = vadd.f32 %v819_v34, %v817_v27  ;;  %v820_v49 = vmax.f32 %v628_v41, 0.0  ;;  %v630_v50 = vadd.f32 %v629_v42, %v1797_v3 }
 0x106   :  { %v461_v46 = vpop.f32.mrf.mxu0  ;;  %v631_v51 = vpop.f32.mrf.mxu1  ;;  %v460_v54 = vadd.f32 %v459_v39, %v1797_v3  ;;  %v752_v62 = vmax.f32 %v458_v45, 0.0  ;;  %v871_v35 = vrot.slane %v1841_v31, 4 }
 0x107   :  { %v462_v55 = vadd.f32 %v461_v46, %v1793_v0  ;;  %v995_v58 = vadd.f32 %v994_v40, %v820_v49  ;;  %v821_v59 = vmax.f32 %v630_v50, 0.0  ;;  %v632_v60 = vadd.f32 %v631_v51, %v1793_v0 }
 0x108   :  { %v463_v57 = vpop.f32.mrf.mxu0  ;;  %v633_v61 = vpop.f32.mrf.mxu1  ;;  %v753_v13 = vmax.f32 %v460_v54, 0.0 }
 0x109   :  { %v754_v63 = vmax.f32 %v462_v55, 0.0  ;;  %v464_v1 = vadd.f32 %v463_v57, %v1797_v3  ;;  %v1008_v6 = vadd.f32 %v1007_v47, %v821_v59  ;;  %v822_v7 = vmax.f32 %v632_v60, 0.0 }
 0x10a   :  { %v467_v4 = vpop.f32.mrf.mxu0  ;;  %v634_v9 = vadd.f32 %v633_v61, %v1797_v3  ;;  %v637_v10 = vpop.f32.mrf.mxu1  ;;  %v884_v47 = vrot.slane %v1853_v44, 4 }
 0x10b   :  { %v890_v14 = vadd.f32 %v754_v63, %v752_v62  ;;  %v755_v15 = vmax.f32 %v464_v1, 0.0  ;;  %v468_v16 = vadd.f32 %v467_v4, %v1793_v0  ;;  %v996_v19 = vadd.f32 %v995_v58, %v822_v7 }
 0x10c   :  { %v469_v18 = vpop.f32.mrf.mxu0  ;;  %v823_v20 = vmax.f32 %v634_v9, 0.0  ;;  %v638_v21 = vadd.f32 %v637_v10, %v1793_v0  ;;  %v639_v22 = vpop.f32.mrf.mxu1  ;;  %v872_v58 = vadd.f32 %v871_v35, %v1841_v31  ;;  %v885_v7 = vadd.f32 %v884_v47, %v1853_v44 }
 0x10d   :  { %v903_v24 = vadd.f32 %v755_v15, %v753_v13  ;;  %v470_v25 = vadd.f32 %v469_v18, %v1797_v3  ;;  %v756_v26 = vmax.f32 %v468_v16, 0.0  ;;  %v640_v32 = vadd.f32 %v639_v22, %v1797_v3 }
 0x10e   :  { %v471_v27 = vpop.f32.mrf.mxu0  ;;  %v1009_v29 = vadd.f32 %v1008_v6, %v823_v20  ;;  %v824_v30 = vmax.f32 %v638_v21, 0.0  ;;  %v641_v34 = vpop.f32.mrf.mxu1  ;;  %v873_v21 = vrot.slane %v872_v58, 2 }
 0x10f   :  { %v757_v36 = vmax.f32 %v470_v25, 0.0  ;;  %v472_v37 = vadd.f32 %v471_v27, %v1793_v0  ;;  %v891_v39 = vadd.f32 %v890_v14, %v756_v26  ;;  %v825_v42 = vmax.f32 %v640_v32, 0.0 }
 0x110   :  { %v473_v40 = vpop.f32.mrf.mxu0  ;;  %v997_v41 = vadd.f32 %v996_v19, %v824_v30  ;;  %v642_v45 = vadd.f32 %v641_v34, %v1793_v0  ;;  %v643_v46 = vpop.f32.mrf.mxu1  ;;  %v886_v32 = vrot.slane %v885_v7, 2 }
 0x111   :  { %v904_v49 = vadd.f32 %v903_v24, %v757_v36  ;;  %v758_v50 = vmax.f32 %v472_v37, 0.0  ;;  %v474_v51 = vadd.f32 %v473_v40, %v1797_v3  ;;  %v1010_v54 = vadd.f32 %v1009_v29, %v825_v42 }
 0x112   :  { %v477_v52 = vpop.f32.mrf.mxu0  ;;  %v826_v55 = vmax.f32 %v642_v45, 0.0  ;;  %v644_v56 = vadd.f32 %v643_v46, %v1797_v3  ;;  %v647_v57 = vpop.f32.mrf.mxu1  ;;  %v874_v42 = vadd.f32 %v873_v21, %v872_v58 }
 0x113   :  { %v892_v59 = vadd.f32 %v891_v39, %v758_v50  ;;  %v478_v60 = vadd.f32 %v477_v52, %v1793_v0  ;;  %v759_v61 = vmax.f32 %v474_v51, 0.0  ;;  %v648_v4 = vadd.f32 %v647_v57, %v1793_v0 }
 0x114   :  { %v479_v62 = vpop.f32.mrf.mxu0  ;;  %v998_v63 = vadd.f32 %v997_v41, %v826_v55  ;;  %v827_v1 = vmax.f32 %v644_v56, 0.0  ;;  %v649_v6 = vpop.f32.mrf.mxu1  ;;  %v887_v52 = vadd.f32 %v886_v32, %v885_v7 }
 0x115   :  { %v760_v9 = vmax.f32 %v478_v60, 0.0  ;;  %v480_v10 = vadd.f32 %v479_v62, %v1797_v3  ;;  %v905_v11 = vadd.f32 %v904_v49, %v759_v61  ;;  %v828_v15 = vmax.f32 %v648_v4, 0.0 }
 0x116   :  { %v481_v13 = vpop.f32.mrf.mxu0  ;;  %v1011_v14 = vadd.f32 %v1010_v54, %v827_v1  ;;  %v650_v31 = vadd.f32 %v649_v6, %v1797_v3  ;;  %v651_v16 = vpop.f32.mrf.mxu1  ;;  %v875_v60 = vrot.slane %v874_v42, 1  ;;  %v888_v4 = vrot.slane %v887_v52, 1 }
 0x117   :  { %v893_v18 = vadd.f32 %v892_v59, %v760_v9  ;;  %v761_v19 = vmax.f32 %v480_v10, 0.0  ;;  %v482_v20 = vadd.f32 %v481_v13, %v1793_v0  ;;  %v999_v24 = vadd.f32 %v998_v63, %v828_v15 }
 0x118   :  { %v483_v22 = vpop.f32.mrf.mxu0  ;;  %v829_v25 = vmax.f32 %v650_v31, 0.0  ;;  %v652_v44 = vadd.f32 %v651_v16, %v1793_v0  ;;  %v1889_v26 = vpop.f32.mrf.mxu1  ;;  %v876_v13 = vadd.f32 %v875_v60, %v874_v42 }
 0x119   :  { %v906_v27 = vadd.f32 %v905_v11, %v761_v19  ;;  %v762_v29 = vmax.f32 %v482_v20, 0.0  ;;  %v484_v30 = vadd.f32 %v483_v22, %v1797_v3 }
 0x11a   :  { %v487_v34 = vpop.f32.mrf.mxu0  ;;  %v1892_v35 = vadd.f32 %v1011_v14, %v829_v25  ;;  %v830_v36 = vmax.f32 %v652_v44, 0.0  ;;  %v657_v37 = vpop.f32.mrf.mxu1  ;;  %v1073_v25 = vmul.f32 0.015625, %v876_v13 }
 0x11b   :  { %v894_v39 = vadd.f32 %v893_v18, %v762_v29  ;;  %v763_v40 = vmax.f32 %v484_v30, 0.0  ;;  %v488_v41 = vadd.f32 %v487_v34, %v1793_v0  ;;  %v889_v18 = vadd.f32 %v888_v4, %v887_v52 }
 0x11c   :  { %v489_v45 = vpop.f32.mrf.mxu0  ;;  %v1895_v46 = vadd.f32 %v999_v24, %v830_v36  ;;  %v659_v47 = vpop.f32.mrf.mxu1 }
 0x11d   :  { %v907_v49 = vadd.f32 %v906_v27, %v763_v40  ;;  %v764_v50 = vmax.f32 %v488_v41, 0.0  ;;  %v490_v51 = vadd.f32 %v489_v45, %v1797_v3  ;;  %v1074_v36 = vmul.f32 0.015625, %v889_v18 }
 0x11e   :  { %v491_v54 = vpop.f32.mrf.mxu0  ;;  %v661_v55 = vpop.f32.mrf.mxu1 }
 0x11f   :  { %v895_v56 = vadd.f32 %v894_v39, %v764_v50  ;;  %v765_v57 = vmax.f32 %v490_v51, 0.0  ;;  %v492_v59 = vadd.f32 %v491_v54, %v1793_v0  ;;  %v658_v39 = vadd.f32 %v657_v37, %v1793_v0 }
 0x120   :  { %v493_v61 = vpop.f32.mrf.mxu0  ;;  %v663_v62 = vpop.f32.mrf.mxu1  ;;  %v1089_v54 = vpack.c.bf16 %v1073_v25, %v1073_v25 }
 0x121   :  { %v908_v63 = vadd.f32 %v907_v49, %v765_v57  ;;  %v766_v58 = vmax.f32 %v492_v59, 0.0  ;;  %v494_v1 = vadd.f32 %v493_v61, %v1797_v3  ;;  %v662_v49 = vadd.f32 %v661_v55, %v1793_v0 }
 0x122   :  { %v497_v6 = vpop.f32.mrf.mxu0  ;;  %v667_v9 = vpop.f32.mrf.mxu1  ;;  %v1090_v59 = vpack.c.bf16 %v1074_v36, %v1074_v36  ;;  %v832_v60 = vmax.f32 %v658_v39, 0.0  ;;  %v660_v61 = vadd.f32 %v659_v47, %v1797_v3 }
 0x123   :  { %v896_v10 = vadd.f32 %v895_v56, %v766_v58  ;;  %v767_v11 = vmax.f32 %v494_v1, 0.0  ;;  %v498_v16 = vadd.f32 %v497_v6, %v1793_v0  ;;  %v834_v4 = vmax.f32 %v662_v49, 0.0 }
 0x124   :  { %v499_v7 = vpop.f32.mrf.mxu0  ;;  %v1900_v14 = vpop.f32.mrf.mxu1  ;;  %v664_v6 = vadd.f32 %v663_v62, %v1797_v3 }
 0x125   :  { %v897_v15 = vrot.slane %v896_v10, 4  ;;  %v909_v31 = vadd.f32 %v908_v63, %v767_v11  ;;  %v768_v32 = vmax.f32 %v498_v16, 0.0  ;;  %v500_v55 = vadd.f32 %v499_v7, %v1797_v3 }
 0x126   :  { %v501_v19 = vpop.f32.mrf.mxu0  ;;  %v1903_v20 = vpop.f32.mrf.mxu1  ;;  %v668_v11 = vadd.f32 %v667_v9, %v1793_v0  ;;  %v1020_v9 = vadd.f32 %v834_v4, %v832_v60 }
 0x127   :  { %v898_v21 = vadd.f32 %v897_v15, %v896_v10  ;;  %v910_v22 = vrot.slane %v909_v31, 4  ;;  %v502_v24 = vadd.f32 %v501_v19, %v1793_v0  ;;  %v1159_v19 = vunpack.c.l.b16 %v1090_v59 }
 0x128   :  { %v503_v44 = vpop.f32.mrf.mxu0  ;;  %v1906_v27 = vpop.f32.mrf.mxu1 }
 0x129   :  { %v899_v29 = vrot.slane %v898_v21, 2  ;;  %v911_v30 = vadd.f32 %v910_v22, %v909_v31  ;;  %v770_v34 = vmax.f32 %v502_v24, 0.0  ;;  %v504_v10 = vadd.f32 %v503_v44, %v1797_v3 }
 0x12a   :  { %v507_v40 = vpop.f32.mrf.mxu0  ;;  %v1909_v41 = vpop.f32.mrf.mxu1  ;;  %v1158_v31 = vunpack.c.l.b16 %v1089_v54  ;;  %v670_v54 = vadd.f32 %v1900_v14, %v1797_v3 }
 0x12b   :  { %v900_v42 = vadd.f32 %v899_v29, %v898_v21  ;;  %v912_v45 = vrot.slane %v911_v30, 2  ;;  %v916_v50 = vadd.f32 %v770_v34, %v768_v32  ;;  %v508_v18 = vadd.f32 %v507_v40, %v1793_v0 }
 0x12c   :  { %v509_v51 = vpop.f32.mrf.mxu0  ;;  %v1912_v52 = vpop.f32.mrf.mxu1  ;;  %v833_v21 = vmax.f32 %v660_v61, 0.0  ;;  %v835_v29 = vmax.f32 %v664_v6, 0.0  ;;  %v771_v32 = vmax.f32 %v504_v10, 0.0  ;;  %v836_v34 = vmax.f32 %v668_v11, 0.0 }
 0x12d   :  { %v901_v56 = vrot.slane %v900_v42, 1  ;;  %v913_v57 = vadd.f32 %v912_v45, %v911_v30  ;;  %v510_v22 = vadd.f32 %v509_v51, %v1797_v3  ;;  %v769_v30 = vmax.f32 %v500_v55, 0.0 }
 0x12e   :  { %v511_v63 = vpop.f32.mrf.mxu0  ;;  %v1915_v37 = vpop.f32.mrf.mxu1  ;;  %v772_v49 = vmax.f32 %v508_v18, 0.0  ;;  %v1033_v6 = vadd.f32 %v835_v29, %v833_v21  ;;  %v837_v18 = vmax.f32 %v670_v54, 0.0 }
 0x12f   :  { %v902_v58 = vadd.f32 %v901_v56, %v900_v42  ;;  %v914_v1 = vrot.slane %v913_v57, 1  ;;  %v512_v62 = vadd.f32 %v511_v63, %v1793_v0  ;;  %v773_v56 = vmax.f32 %v510_v22, 0.0 }
 0x130   :  { %v513_v13 = vpop.f32.mrf.mxu0  ;;  %v1921_v15 = vpop.f32.mrf.mxu1  ;;  %v929_v55 = vadd.f32 %v771_v32, %v769_v30  ;;  %v1952_v32 = vadd.f32 %v1795_v2, %v1793_v0  ;;  %v1965_v2 = vadd.f32 %v1802_v8, %v1793_v0 }
 0x131   :  { %v1075_v47 = vmul.f32 0.015625, %v902_v58  ;;  %v915_v16 = vadd.f32 %v914_v1, %v913_v57  ;;  %v514_v36 = vadd.f32 %v513_v13, %v1797_v3  ;;  %v672_v57 = vadd.f32 %v1903_v20, %v1793_v0 }
 0x132   :  { %v517_v24 = vpop.f32.mrf.mxu0  ;;  %v1926_v7 = vpop.f32.mrf.mxu1  ;;  %v774_v59 = vmax.f32 %v512_v62, 0.0  ;;  %v917_v13 = vadd.f32 %v916_v50, %v772_v49  ;;  %v930_v22 = vadd.f32 %v929_v55, %v773_v56  ;;  %v674_v50 = vadd.f32 %v1906_v27, %v1797_v3 }
 0x133   :  { %v1091_v25 = vpack.c.bf16 %v1075_v47, %v1075_v47  ;;  %v1076_v44 = vmul.f32 0.015625, %v915_v16  ;;  %v518_v51 = vadd.f32 %v517_v24, %v1793_v0  ;;  %v775_v10 = vmax.f32 %v514_v36, 0.0 }
 0x134   :  { %v519_v39 = vpop.f32.mrf.mxu0  ;;  %v1929_v40 = vpop.f32.mrf.mxu1  ;;  %v838_v62 = vmax.f32 %v672_v57, 0.0  ;;  %v1034_v27 = vadd.f32 %v1033_v6, %v837_v18  ;;  %v680_v55 = vadd.f32 %v1912_v52, %v1797_v3 }
 0x135   :  { %v1160_v42 = vunpack.c.l.b16 %v1091_v25  ;;  %v1092_v45 = vpack.c.bf16 %v1076_v44, %v1076_v44  ;;  %v520_v1 = vadd.f32 %v519_v39, %v1797_v3  ;;  %v776_v47 = vmax.f32 %v518_v51, 0.0 }
 0x136   :  { %v521_v60 = vpop.f32.mrf.mxu0  ;;  %v1936_v61 = vpop.f32.mrf.mxu1  ;;  %v918_v44 = vadd.f32 %v917_v13, %v774_v59  ;;  %v1961_v51 = vadd.f32 %v1799_v5, %v1797_v3  ;;  %v682_v5 = vadd.f32 %v1915_v37, %v1793_v0  ;;  %v841_v37 = vmax.f32 %v680_v55, 0.0 }
 0x137   :  { %v1939_v63 = vsel %vm1174_vm0, %v1160_v42, %v1158_v31  ;;  %v1161_v58 = vunpack.c.l.b16 %v1092_v45  ;;  %v522_v4 = vadd.f32 %v521_v60, %v1793_v0  ;;  %v1021_v31 = vadd.f32 %v1020_v9, %v836_v34 }
 0x138   :  { %v523_v14 = vpop.f32.mrf.mxu0  ;;  %v1943_v11 = vpop.f32.mrf.mxu1  ;;  %v777_v21 = vmax.f32 %v520_v1, 0.0  ;;  %v678_v9 = vadd.f32 %v1909_v41, %v1793_v0  ;;  %v919_v39 = vadd.f32 %v918_v44, %v776_v47  ;;  %v839_v1 = vmax.f32 %v674_v50, 0.0 }
 0x139   :  { %v1946_v20 = vsel %vm1174_vm0, %v1161_v58, %v1159_v19  ;;  %v524_v16 = vadd.f32 %v523_v14, %v1797_v3  ;;  %v778_v29 = vmax.f32 %v522_v4, 0.0  ;;  %v931_v19 = vadd.f32 %v930_v22, %v775_v10 }
 0x13a   :  { %v527_v24 = vpop.f32.mrf.mxu0  ;;  %v697_v25 = vpop.f32.mrf.mxu1  ;;  %v1022_v54 = vadd.f32 %v1021_v31, %v838_v62  ;;  %v840_v4 = vmax.f32 %v678_v9, 0.0 }
 0x13b   :  { %v528_v30 = vadd.f32 %v527_v24, %v1793_v0  ;;  %v779_v42 = vmax.f32 %v524_v16, 0.0  ;;  %v932_v41 = vadd.f32 %v931_v19, %v777_v21  ;;  %v920_v59 = vadd.f32 %v919_v39, %v778_v29 }
 0x13c   :  { %v529_v34 = vpop.f32.mrf.mxu0  ;;  %v699_v36 = vpop.f32.mrf.mxu1  ;;  %v1035_v21 = vadd.f32 %v1034_v27, %v839_v1  ;;  %v1023_v50 = vadd.f32 %v1022_v54, %v840_v4  ;;  %v842_v19 = vmax.f32 %v682_v5, 0.0  ;;  %v1978_v39 = vadd.f32 %v1806_v12, %v1797_v3 }
 0x13d   :  { %v780_v45 = vmax.f32 %v528_v30, 0.0  ;;  %v530_v49 = vadd.f32 %v529_v34, %v1797_v3  ;;  %v933_v14 = vadd.f32 %v932_v41, %v779_v42  ;;  %v684_v42 = vadd.f32 %v1921_v15, %v1797_v3 }
 0x13e   :  { %v531_v56 = vpop.f32.mrf.mxu0  ;;  %v701_v57 = vpop.f32.mrf.mxu1  ;;  %v1986_v41 = vadd.f32 %v1809_v17, %v1793_v0  ;;  %v1991_v12 = vadd.f32 %v1889_v26, %v1797_v3  ;;  %v1995_v15 = vadd.f32 %v1926_v7, %v1793_v0  ;;  %v1998_v4 = vadd.f32 %v1023_v50, %v842_v19 }
 0x13f   :  { %v781_v60 = vmax.f32 %v530_v49, 0.0  ;;  %v532_v58 = vadd.f32 %v531_v56, %v1793_v0  ;;  %v921_v6 = vadd.f32 %v920_v59, %v780_v45  ;;  %v698_v45 = vadd.f32 %v697_v25, %v1793_v0 }
 0x140   :  { %v533_v10 = vpop.f32.mrf.mxu0  ;;  %v703_v8 = vpop.f32.mrf.mxu1  ;;  %v702_v49 = vadd.f32 %v701_v57, %v1793_v0  ;;  %v2002_v17 = vadd.f32 %v1929_v40, %v1797_v3  ;;  %v843_v5 = vmax.f32 %v684_v42, 0.0  ;;  %v844_v19 = vmax.f32 %v1995_v15, 0.0 }
 0x141   :  { %v782_v13 = vmax.f32 %v532_v58, 0.0  ;;  %v534_v47 = vadd.f32 %v533_v10, %v1797_v3  ;;  %v934_v22 = vadd.f32 %v933_v14, %v781_v60  ;;  %v700_v60 = vadd.f32 %v699_v36, %v1797_v3 }
 0x142   :  { %v537_v16 = vpop.f32.mrf.mxu0  ;;  %v707_v31 = vpop.f32.mrf.mxu1  ;;  %v1036_v58 = vadd.f32 %v1035_v21, %v841_v37  ;;  %v704_v25 = vadd.f32 %v703_v8, %v1797_v3  ;;  %v848_v26 = vmax.f32 %v698_v45, 0.0  ;;  %v850_v10 = vmax.f32 %v702_v49, 0.0 }
 0x143   :  { %v922_v62 = vadd.f32 %v921_v6, %v782_v13  ;;  %v783_v24 = vmax.f32 %v534_v47, 0.0  ;;  %v708_v14 = vadd.f32 %v707_v31, %v1793_v0  ;;  %v849_v8 = vmax.f32 %v700_v60, 0.0 }
 0x144   :  { %v539_v29 = vpop.f32.mrf.mxu0  ;;  %v709_v30 = vpop.f32.mrf.mxu1  ;;  %v1046_v45 = vadd.f32 %v850_v10, %v848_v26 }
 0x145   :  { %v923_v9 = vrot.slane %v922_v62, 4  ;;  %v935_v34 = vadd.f32 %v934_v22, %v783_v24  ;;  %v851_v24 = vmax.f32 %v704_v25, 0.0  ;;  %v710_v21 = vadd.f32 %v709_v30, %v1797_v3 }
 0x146   :  { %v541_v56 = vpop.f32.mrf.mxu0  ;;  %v711_v27 = vpop.f32.mrf.mxu1  ;;  %v852_v49 = vmax.f32 %v708_v14, 0.0 }
 0x147   :  { %v924_v54 = vadd.f32 %v923_v9, %v922_v62  ;;  %v936_v59 = vrot.slane %v935_v34, 4  ;;  %v542_v22 = vadd.f32 %v541_v56, %v1793_v0  ;;  %v538_v62 = vadd.f32 %v537_v16, %v1793_v0 }
 0x148   :  { %v543_v57 = vpop.f32.mrf.mxu0  ;;  %v713_v1 = vpop.f32.mrf.mxu1  ;;  %v712_v56 = vadd.f32 %v711_v27, %v1793_v0  ;;  %v853_v52 = vmax.f32 %v710_v21, 0.0  ;;  %v1047_v10 = vadd.f32 %v1046_v45, %v852_v49 }
 0x149   :  { %v925_v36 = vrot.slane %v924_v54, 2  ;;  %v937_v55 = vadd.f32 %v936_v59, %v935_v34  ;;  %v544_v40 = vadd.f32 %v543_v57, %v1797_v3  ;;  %v540_v34 = vadd.f32 %v539_v29, %v1797_v3 }
 0x14a   :  { %v547_v6 = vpop.f32.mrf.mxu0  ;;  %v717_v7 = vpop.f32.mrf.mxu1  ;;  %v2013_v59 = vadd.f32 %v1036_v58, %v843_v5  ;;  %v786_v25 = vmax.f32 %v542_v22, 0.0  ;;  %v784_v57 = vmax.f32 %v538_v62, 0.0  ;;  %v854_v14 = vmax.f32 %v712_v56, 0.0 }
 0x14b   :  { %v926_v13 = vadd.f32 %v925_v36, %v924_v54  ;;  %v938_v47 = vrot.slane %v937_v55, 2  ;;  %v1059_v36 = vadd.f32 %v851_v24, %v849_v8  ;;  %v787_v44 = vmax.f32 %v544_v40, 0.0 }
 0x14c   :  { %v549_v37 = vpop.f32.mrf.mxu0  ;;  %v719_v50 = vpop.f32.mrf.mxu1  ;;  %v785_v42 = vmax.f32 %v540_v34, 0.0  ;;  %v548_v26 = vadd.f32 %v547_v6, %v1793_v0  ;;  %v714_v58 = vadd.f32 %v713_v1, %v1797_v3  ;;  %v942_v62 = vadd.f32 %v786_v25, %v784_v57 }
 0x14d   :  { %v927_v31 = vrot.slane %v926_v13, 1  ;;  %v939_v9 = vadd.f32 %v938_v47, %v937_v55  ;;  %v550_v27 = vadd.f32 %v549_v37, %v1797_v3  ;;  %v1060_v21 = vadd.f32 %v1059_v36, %v853_v52 }
 0x14e   :  { %v551_v16 = vpop.f32.mrf.mxu0  ;;  %v721_v54 = vpop.f32.mrf.mxu1  ;;  %v955_v40 = vadd.f32 %v787_v44, %v785_v42  ;;  %v788_v37 = vmax.f32 %v548_v26, 0.0  ;;  %v1048_v56 = vadd.f32 %v1047_v10, %v854_v14 }
 0x14f   :  { %v928_v60 = vadd.f32 %v927_v31, %v926_v13  ;;  %v940_v30 = vrot.slane %v939_v9, 1  ;;  %v552_v8 = vadd.f32 %v551_v16, %v1793_v0  ;;  %v789_v1 = vmax.f32 %v550_v27, 0.0 }
 0x150   :  { %v553_v55 = vpop.f32.mrf.mxu0  ;;  %v723_v47 = vpop.f32.mrf.mxu1  ;;  %v722_v36 = vadd.f32 %v721_v54, %v1793_v0  ;;  %v943_v26 = vadd.f32 %v942_v62, %v788_v37 }
 0x151   :  { %v1077_v29 = vmul.f32 0.015625, %v928_v60  ;;  %v941_v18 = vadd.f32 %v940_v30, %v939_v9  ;;  %v554_v31 = vadd.f32 %v553_v55, %v1797_v3  ;;  %v718_v9 = vadd.f32 %v717_v7, %v1793_v0 }
 0x152   :  { %v557_v5 = vpop.f32.mrf.mxu0  ;;  %v727_v24 = vpop.f32.mrf.mxu1  ;;  %v855_v60 = vmax.f32 %v714_v58, 0.0  ;;  %v790_v42 = vmax.f32 %v552_v8, 0.0  ;;  %v956_v27 = vadd.f32 %v955_v40, %v789_v1 }
 0x153   :  { %v1093_v13 = vpack.c.bf16 %v1077_v29, %v1077_v29  ;;  %v1078_v22 = vmul.f32 0.015625, %v941_v18  ;;  %v558_v49 = vadd.f32 %v557_v5, %v1793_v0  ;;  %v720_v18 = vadd.f32 %v719_v50, %v1797_v3 }
 0x154   :  { %v559_v6 = vpop.f32.mrf.mxu0  ;;  %v729_v16 = vpop.f32.mrf.mxu1  ;;  %v791_v25 = vmax.f32 %v554_v31, 0.0  ;;  %v856_v57 = vmax.f32 %v718_v9, 0.0  ;;  %v1061_v14 = vadd.f32 %v1060_v21, %v855_v60  ;;  %v724_v5 = vadd.f32 %v723_v47, %v1797_v3 }
 0x155   :  { %v1162_v34 = vunpack.c.l.b16 %v1093_v13  ;;  %v1094_v45 = vpack.c.bf16 %v1078_v22, %v1078_v22  ;;  %v560_v7 = vadd.f32 %v559_v6, %v1797_v3  ;;  %v792_v10 = vmax.f32 %v558_v49, 0.0 }
 0x156   :  { %v561_v30 = vpop.f32.mrf.mxu0  ;;  %v857_v58 = vmax.f32 %v720_v18, 0.0  ;;  %v944_v22 = vadd.f32 %v943_v26, %v790_v42  ;;  %v731_v9 = vpop.f32.mrf.mxu1  ;;  %v957_v6 = vadd.f32 %v956_v27, %v791_v25  ;;  %v728_v62 = vadd.f32 %v727_v24, %v1793_v0 }
 0x157   :  { %v2025_v44 = vsel %vm1176_vm1, %v1162_v34, %v1939_v63  ;;  %v1163_v52 = vunpack.c.l.b16 %v1094_v45  ;;  %v562_v55 = vadd.f32 %v561_v30, %v1793_v0  ;;  %v793_v8 = vmax.f32 %v560_v7, 0.0 }
 0x158   :  { %v563_v29 = vpop.f32.mrf.mxu0  ;;  %v1049_v34 = vadd.f32 %v1048_v56, %v856_v57  ;;  %v945_v37 = vadd.f32 %v944_v22, %v792_v10  ;;  %v692_v47 = vadd.f32 %v1936_v61, %v1793_v0  ;;  %v1062_v1 = vadd.f32 %v1061_v14, %v857_v58  ;;  %v733_v24 = vpop.f32.mrf.mxu1 }
 0x159   :  { %v2032_v50 = vsel %vm1176_vm1, %v1163_v52, %v1946_v20  ;;  %v564_v63 = vadd.f32 %v563_v29, %v1797_v3  ;;  %v794_v54 = vmax.f32 %v562_v55, 0.0  ;;  %v858_v20 = vmax.f32 %v722_v36, 0.0 }
 0x15a   :  { %v567_v13 = vpop.f32.mrf.mxu0  ;;  %v859_v60 = vmax.f32 %v724_v5, 0.0  ;;  %v730_v18 = vadd.f32 %v729_v16, %v1797_v3  ;;  %v958_v52 = vadd.f32 %v957_v6, %v793_v8  ;;  %v694_v25 = vadd.f32 %v1943_v11, %v1797_v3 }
 0x15b   :  { %v568_v31 = vadd.f32 %v567_v13, %v1793_v0  ;;  %v795_v49 = vmax.f32 %v564_v63, 0.0  ;;  %v946_v42 = vadd.f32 %v945_v37, %v794_v54  ;;  %v1050_v57 = vadd.f32 %v1049_v34, %v858_v20 }
 0x15c   :  { %v569_v45 = vpop.f32.mrf.mxu0  ;;  %v860_v36 = vmax.f32 %v728_v62, 0.0  ;;  %v732_v55 = vadd.f32 %v731_v9, %v1793_v0  ;;  %v1025_v63 = vadd.f32 %v1998_v4, %v844_v19  ;;  %v1063_v27 = vadd.f32 %v1062_v1, %v859_v60 }
 0x15d   :  { %v796_v40 = vmax.f32 %v568_v31, 0.0  ;;  %v570_v21 = vadd.f32 %v569_v45, %v1797_v3  ;;  %v959_v61 = vadd.f32 %v958_v52, %v795_v49  ;;  %v861_v14 = vmax.f32 %v730_v18, 0.0 }
 0x15e   :  { %v571_v30 = vpop.f32.mrf.mxu0  ;;  %v734_v58 = vadd.f32 %v733_v24, %v1797_v3  ;;  %v846_v11 = vmax.f32 %v692_v47, 0.0  ;;  %v807_v54 = vmax.f32 %v1978_v39, 0.0  ;;  %v831_v31 = vmax.f32 %v1991_v12, 0.0 }
 0x15f   :  { %v797_v56 = vmax.f32 %v570_v21, 0.0  ;;  %v572_v7 = vadd.f32 %v571_v30, %v1793_v0  ;;  %v947_v26 = vadd.f32 %v946_v42, %v796_v40  ;;  %v2103_v9 = vmax.f32 %v2002_v17, 0.0 }
 0x160   :  { %v573_v29 = vpop.f32.mrf.mxu0  ;;  %v847_v15 = vmax.f32 %v694_v25, 0.0  ;;  %v1051_v4 = vadd.f32 %v1050_v57, %v860_v36  ;;  %v862_v19 = vmax.f32 %v732_v55, 0.0  ;;  %v600_v45 = vadd.f32 %v1812_v23, %v1797_v3 }
 0x161   :  { %v798_v10 = vmax.f32 %v572_v7, 0.0  ;;  %v574_v16 = vadd.f32 %v573_v29, %v1797_v3  ;;  %v960_v13 = vadd.f32 %v959_v61, %v797_v56  ;;  %v1038_v6 = vadd.f32 %v2013_v59, %v2103_v9 }
 0x162   :  { %v577_v5 = vpop.f32.mrf.mxu0  ;;  %v1064_v37 = vadd.f32 %v1063_v27, %v861_v14  ;;  %v863_v40 = vmax.f32 %v734_v58, 0.0  ;;  %v808_v12 = vmax.f32 %v1986_v41, 0.0  ;;  %v1026_v21 = vadd.f32 %v1025_v63, %v846_v11 }
 0x163   :  { %v948_v22 = vadd.f32 %v947_v26, %v798_v10  ;;  %v799_v8 = vmax.f32 %v574_v16, 0.0  ;;  %v578_v62 = vadd.f32 %v577_v5, %v1793_v0  ;;  %v602_v47 = vadd.f32 %v1815_v28, %v1793_v0 }
 0x164   :  { %v579_v34 = vpop.f32.mrf.mxu0  ;;  %v1013_v1 = vadd.f32 %v1892_v35, %v831_v31  ;;  %v1039_v60 = vadd.f32 %v1038_v6, %v847_v15  ;;  %v1052_v23 = vadd.f32 %v1051_v4, %v862_v19  ;;  %v604_v41 = vadd.f32 %v1818_v33, %v1797_v3 }
 0x165   :  { %v961_v20 = vadd.f32 %v960_v13, %v799_v8  ;;  %v949_v49 = vrot.slane %v948_v22, 4  ;;  %v580_v17 = vadd.f32 %v579_v34, %v1797_v3  ;;  %v800_v52 = vmax.f32 %v578_v62, 0.0 }
 0x166   :  { %v581_v39 = vpop.f32.mrf.mxu0  ;;  %v1001_v7 = vrot.slane %v1895_v46, 4  ;;  %v1065_v25 = vadd.f32 %v1064_v37, %v863_v40  ;;  %v1027_v57 = vrot.slane %v1026_v21, 4  ;;  %v809_v35 = vmax.f32 %v600_v45, 0.0 }
 0x167   :  { %v582_v59 = vadd.f32 %v581_v39, %v1793_v0  ;;  %v962_v18 = vrot.slane %v961_v20, 4  ;;  %v950_v24 = vadd.f32 %v949_v49, %v948_v22  ;;  %v801_v36 = vmax.f32 %v580_v17, 0.0 }
 0x168   :  { %v583_v30 = vpop.f32.mrf.mxu0  ;;  %v810_v29 = vmax.f32 %v602_v47, 0.0  ;;  %v1014_v61 = vrot.slane %v1013_v1, 4  ;;  %v1040_v10 = vrot.slane %v1039_v60, 4  ;;  %v1053_v16 = vrot.slane %v1052_v23, 4 }
 0x169   :  { %v802_v42 = vmax.f32 %v582_v59, 0.0  ;;  %v584_v56 = vadd.f32 %v583_v30, %v1797_v3  ;;  %v963_v26 = vadd.f32 %v962_v18, %v961_v20  ;;  %v2104_v63 = vmax.f32 %v1952_v32, 0.0 }
 0x16a   :  { %v608_v33 = vadd.f32 %v1821_v38, %v1793_v0  ;;  %v1002_v58 = vadd.f32 %v1001_v7, %v1895_v46  ;;  %v951_v5 = vrot.slane %v950_v24, 2  ;;  %v1066_v11 = vrot.slane %v1065_v25, 4 }
 0x16b   :  { %v968_v28 = vadd.f32 %v802_v42, %v800_v52  ;;  %v803_v55 = vmax.f32 %v584_v56, 0.0  ;;  %v811_v13 = vmax.f32 %v604_v41, 0.0  ;;  %v1028_v22 = vadd.f32 %v1027_v57, %v1026_v21 }
 0x16c   :  { %v2105_v8 = vmax.f32 %v1965_v2, 0.0  ;;  %v2106_v9 = vmax.f32 %v1961_v51, 0.0  ;;  %v610_v32 = vadd.f32 %v1824_v43, %v1797_v3  ;;  %v612_v15 = vadd.f32 %v1827_v48, %v1793_v0 }
 0x16d   :  { %v969_v27 = vadd.f32 %v968_v28, %v2104_v63  ;;  %v981_v14 = vadd.f32 %v803_v55, %v801_v36  ;;  %v1015_v34 = vadd.f32 %v1014_v61, %v1013_v1  ;;  %v964_v38 = vrot.slane %v963_v26, 2 }
 0x16e   :  { %v1041_v4 = vadd.f32 %v1040_v10, %v1039_v60  ;;  %v1054_v46 = vadd.f32 %v1053_v16, %v1052_v23  ;;  %v812_v62 = vmax.f32 %v608_v33, 0.0  ;;  %v1003_v45 = vrot.slane %v1002_v58, 2 }
 0x16f   :  { %v970_v31 = vadd.f32 %v969_v27, %v2105_v8  ;;  %v982_v6 = vadd.f32 %v981_v14, %v2106_v9  ;;  %v952_v37 = vadd.f32 %v951_v5, %v950_v24  ;;  %v1067_v2 = vadd.f32 %v1066_v11, %v1065_v25 }
 0x170   :  { %v614_v51 = vadd.f32 %v1830_v53, %v1797_v3  ;;  %v1029_v49 = vrot.slane %v1028_v22, 2  ;;  %v813_v43 = vmax.f32 %v610_v32, 0.0  ;;  %v814_v21 = vmax.f32 %v612_v15, 0.0 }
 0x171   :  { %v971_v19 = vadd.f32 %v970_v31, %v808_v12  ;;  %v983_v20 = vadd.f32 %v982_v6, %v807_v54  ;;  %v1016_v17 = vrot.slane %v1015_v34, 2  ;;  %v965_v0 = vadd.f32 %v964_v38, %v963_v26 }
 0x172   :  { %v1042_v48 = vrot.slane %v1041_v4, 2  ;;  %v1055_v59 = vrot.slane %v1054_v46, 2  ;;  %v1004_v12 = vadd.f32 %v1003_v45, %v1002_v58  ;;  %v953_v54 = vrot.slane %v952_v37, 1 }
 0x173   :  { %v972_v40 = vadd.f32 %v971_v19, %v810_v29  ;;  %v984_v39 = vadd.f32 %v983_v20, %v809_v35  ;;  %v1068_v60 = vrot.slane %v1067_v2, 2  ;;  %v815_v18 = vmax.f32 %v614_v51, 0.0 }
 0x174   :  { %v1030_v30 = vadd.f32 %v1029_v49, %v1028_v22  ;;  %v1017_v42 = vadd.f32 %v1016_v17, %v1015_v34  ;;  %v966_v3 = vrot.slane %v965_v0, 1  ;;  %v1043_v53 = vadd.f32 %v1042_v48, %v1041_v4 }
 0x175   :  { %v973_v47 = vadd.f32 %v972_v40, %v812_v62  ;;  %v985_v1 = vadd.f32 %v984_v39, %v811_v13  ;;  %v1056_v56 = vadd.f32 %v1055_v59, %v1054_v46  ;;  %v1005_v24 = vrot.slane %v1004_v12, 1 }
 0x176   :  { %v954_v25 = vadd.f32 %v953_v54, %v952_v37  ;;  %v1069_v57 = vadd.f32 %v1068_v60, %v1067_v2  ;;  %v1031_v36 = vrot.slane %v1030_v30, 1  ;;  %v1018_v35 = vrot.slane %v1017_v42, 1 }
 0x177   :  { %v974_v23 = vadd.f32 %v973_v47, %v814_v21  ;;  %v986_v52 = vadd.f32 %v985_v1, %v813_v43  ;;  %v967_v29 = vadd.f32 %v966_v3, %v965_v0  ;;  %v1044_v61 = vrot.slane %v1043_v53, 1 }
 0x178   :  { %v1057_v26 = vrot.slane %v1056_v56, 1  ;;  %v1006_v63 = vadd.f32 %v1005_v24, %v1004_v12  ;;  %v1079_v27 = vmul.f32 0.015625, %v954_v25  ;;  %v1070_v14 = vrot.slane %v1069_v57, 1 }
 0x179   :  { %v975_v41 = vrot.slane %v974_v23, 4  ;;  %v987_v7 = vadd.f32 %v986_v52, %v815_v18  ;;  %v1032_v33 = vadd.f32 %v1031_v36, %v1030_v30  ;;  %v1019_v11 = vadd.f32 %v1018_v35, %v1017_v42 }
 0x17a   :  { %v1080_v13 = vmul.f32 0.015625, %v967_v29  ;;  %v1045_v22 = vadd.f32 %v1044_v61, %v1043_v53  ;;  %v1058_v8 = vadd.f32 %v1057_v26, %v1056_v56  ;;  %v1083_v6 = vmul.f32 0.015625, %v1006_v63 }
 0x17b   :  { %v976_v28 = vadd.f32 %v975_v41, %v974_v23  ;;  %v988_v55 = vrot.slane %v987_v7, 4  ;;  %v1095_v32 = vpack.c.bf16 %v1079_v27, %v1079_v27  ;;  %v1071_v15 = vadd.f32 %v1070_v14, %v1069_v57 }
 0x17c   :  { %v1085_v34 = vmul.f32 0.015625, %v1032_v33  ;;  %v1084_v46 = vmul.f32 0.015625, %v1019_v11  ;;  %v1096_v19 = vpack.c.bf16 %v1080_v13, %v1080_v13  ;;  %v1086_v20 = vmul.f32 0.015625, %v1045_v22 }
 0x17d   :  { %v977_v10 = vrot.slane %v976_v28, 2  ;;  %v989_v16 = vadd.f32 %v988_v55, %v987_v7  ;;  %v1087_v62 = vmul.f32 0.015625, %v1058_v8  ;;  %v1099_v2 = vpack.c.bf16 %v1083_v6, %v1083_v6 }
 0x17e   :  { %v1164_v51 = vunpack.c.l.b16 %v1095_v32  ;;  %v1088_v49 = vmul.f32 0.015625, %v1071_v15  ;;  %v1101_v40 = vpack.c.bf16 %v1085_v34, %v1085_v34  ;;  %v1100_v21 = vpack.c.bf16 %v1084_v46, %v1084_v46 }
 0x17f   :  { %v978_v58 = vadd.f32 %v977_v10, %v976_v28  ;;  %v990_v5 = vrot.slane %v989_v16, 2  ;;  %v1165_v17 = vunpack.c.l.b16 %v1096_v19  ;;  %v1102_v0 = vpack.c.bf16 %v1086_v20, %v1086_v20 }
 0x180   :  { %v1103_v48 = vpack.c.bf16 %v1087_v62, %v1087_v62  ;;  %v1168_v1 = vunpack.c.l.b16 %v1099_v2  ;;  %v1179_v12 = vsel %vm1178_vm2, %v1164_v51, %v2025_v44  ;;  %v1104_v54 = vpack.c.bf16 %v1088_v49, %v1088_v49 }
 0x181   :  { %v979_v31 = vrot.slane %v978_v58, 1  ;;  %v991_v9 = vadd.f32 %v990_v5, %v989_v16  ;;  %v1170_v60 = vunpack.c.l.b16 %v1101_v40  ;;  %v1169_v23 = vunpack.c.l.b16 %v1100_v21 }
 0x182   :  { %v1190_v42 = vsel %vm1178_vm2, %v1165_v17, %v2032_v50  ;;  %v1171_v3 = vunpack.c.l.b16 %v1102_v0  ;;  %v1172_v53 = vunpack.c.l.b16 %v1103_v48  ;;  %v1173_v7 = vunpack.c.l.b16 %v1104_v54  ;;  %v1404_v50 = vld [vmem:[%s2101_s3 + $0x1] ss:$0 sm:$0xff] }
 0x183   :  { %v980_v38 = vadd.f32 %v979_v31, %v978_v58  ;;  %v992_v4 = vrot.slane %v991_v9, 1 }
 0x185   :  { %v993_v45 = vadd.f32 %v992_v4, %v991_v9  ;;  %v1081_v37 = vmul.f32 0.015625, %v980_v38 }
 0x187   :  { %v1082_v39 = vmul.f32 0.015625, %v993_v45  ;;  %v1097_v43 = vpack.c.bf16 %v1081_v37, %v1081_v37 }
 0x189   :  { %v1098_v59 = vpack.c.bf16 %v1082_v39, %v1082_v39  ;;  %v1166_v47 = vunpack.c.l.b16 %v1097_v43 }
 0x18b   :  { %v1167_v18 = vunpack.c.l.b16 %v1098_v59  ;;  %v1181_v30 = vsel %vm1180_vm3, %v1166_v47, %v1179_v12 }
 0x18c   :  { %v1183_v52 = vsel %vm1182_vm4, %v1168_v1, %v1181_v30 }
 0x18d   :  { %v1185_v56 = vsel %vm1184_vm5, %v1170_v60, %v1183_v52  ;;  %v1191_v41 = vsel %vm1180_vm3, %v1167_v18, %v1190_v42 }
 0x18e   :  { %v1192_v44 = vsel %vm1182_vm4, %v1169_v23, %v1191_v41  ;;  %v1187_v24 = vsel %vm1186_vm6, %v1172_v53, %v1185_v56 }
 0x18f   :  { %v1193_v25 = vsel %vm1184_vm5, %v1171_v3, %v1192_v44  ;;  %v1195_v28 = vpack.c.b16 %v1187_v24, %v1187_v24 }
 0x190   :  { %v1194_v57 = vsel %vm1186_vm6, %v1173_v7, %v1193_v25 }
 0x191   :  { %v1196_v36 = vpack.c.b16 %v1194_v57, %v1194_v57 }
 0x193   :  { %1327 = vmatprep.mubr.bf16.mxu1 %v1196_v36 }
 0x194   :  { %1328 = vmatmul.mubr.bf16.vlgmr.msra.gmra.mxu1 %v1195_v28 }
 0x254   :  { %v1437_v55 = vpop.f32.mrf.mxu1 }
 0x256   :  { %v1438_v35 = vpop.f32.mrf.mxu1 }
 0x257   :  { %v1439_v29 = vadd.f32 %v1438_v35, %v1437_v55 }
 0x258   :  { %v1440_v61 = vpop.f32.mrf.mxu1 }
 0x259   :  { %v1330_v26 = vadd.f32 %v1439_v29, %v1404_v50 }
 0x25a   :  { %v1441_v10 = vpop.f32.mrf.mxu1 }
 0x25b   :  { %v1335_v16 = vmul.f32 %v1330_v26, %v1330_v26 }
 0x25d   :  { %1336 = vadd.xlane.f32.xlu0 %v1335_v16 }
 0x2e6   :  { %v1337_v63 = vpop.xlane.xlu0 %1336 }
 0x2e7   :  { %v1338_v27 = vmax.f32 %v1337_v63, 1e-24 }
 0x2e9   :  { %1533 = vrsqrt.f32 %v1338_v27 }
 0x2f6   :  { %v1534_v14 = vpop.eup %1533 }
 0x2f7   :  { %v1340_v33 = vmul.f32 %v1534_v14, %v1330_v26 }
 0x2f9   :  { %1341 = vst [vmem:[#allocation2] sm:$0xff] %v1340_v33 }
 0x2fa   :  { %1546 = shalt.err (!%p1543_p4)
}
 0x2fb   :  { %1351 = dma.vmem_to_hbm [thread:$0]  %s1349_s0, 128, %s2102_s4, [#allocation3]  }
 0x2fc   :  { %1555 = dma.done.wait [#allocation3], 128  }
 0x2fd   :  { %1556 = vsyncadd [#allocation3], 4294967168 }
 0x2fe   :  { %1355 = vsyncpa [#allocation3], 1 }

</bundles_post_ra>
